<compile_context>
chip_gen: v7x
topology: tpu7x:2x2x1
jax: 0.10.0
libtpu: 0.0.40
codegen_flags: <defaults>
</compile_context>

<pallas_src>
import functools

import jax
import jax.numpy as jnp
from jax.experimental import pallas as pl
from jax.experimental.pallas import tpu as pltpu

EPS = 1e-5
# Scoped VMEM budget: safe on v5e/v6e (128 MiB physical) and v7x (64 MiB physical).
# Raise toward ~48 MiB (v7x) / ~100 MiB (v6e) if the M tile is made much larger.
VMEM_LIMIT_BYTES = 32 * 1024 * 1024


def _round_up(x, m):
    return (x + m - 1) // m * m


# ---------------------------------------------------------------------------
# Pass 1: conv-as-matmul (transposed, lane-dense on M) + per-channel statistics.
# ---------------------------------------------------------------------------
def conv_stats_kernel(patches_ref, w_ref, gamma_ref, beta_ref,
                      conv_ref, scale_ref, shift_ref,
                      sum_acc, sq_acc, *, inv_m):
    """patches_ref: (K, TM) bf16;  w_ref: (Cp, K) bf16;  gamma/beta: (Cp, 1) f32
    conv_ref: (Cp, TM) f32 (lane-dense);  scale/shift: (Cp, 1) f32 (resident outputs)
    sum_acc / sq_acc: (Cp, 1) f32 VMEM scratch persisting across the M-tile grid."""
    i = pl.program_id(0)

    @pl.when(i == 0)
    def _init():
        sum_acc[...] = jnp.zeros_like(sum_acc)
        sq_acc[...] = jnp.zeros_like(sq_acc)

    # Convolution tile on the MXU: (Cp, K) @ (K, TM) -> (Cp, TM), f32 accumulation.
    acc = jnp.dot(w_ref[...], patches_ref[...], preferred_element_type=jnp.float32)
    conv_ref[...] = acc  # last dim = TM (multiple of 128) => unmasked stores

    # Per-channel partial sums over this M tile (lane reduction -> XLU slot).
    sum_acc[...] = sum_acc[...] + jnp.sum(acc, axis=1, keepdims=True)
    sq_acc[...] = sq_acc[...] + jnp.sum(acc * acc, axis=1, keepdims=True)

    # Finalize into a fused scale/shift (resident outputs, written back once at the end).
    @pl.when(i == pl.num_programs(0) - 1)
    def _finalize():
        mean = sum_acc[...] * inv_m
        var = jnp.maximum(sq_acc[...] * inv_m - mean * mean, 0.0)
        inv_std = jax.lax.rsqrt(var + EPS)          # EUP rsqrt (free slot)
        scale = gamma_ref[...] * inv_std
        scale_ref[...] = scale
        shift_ref[...] = beta_ref[...] - mean * scale


# ---------------------------------------------------------------------------
# Pass 2: mem-bound normalize, out = conv * scale + shift.
# ---------------------------------------------------------------------------
def bn_apply_kernel(conv_ref, scale_ref, shift_ref, out_ref):
    out_ref[...] = (conv_ref[...] * scale_ref[...] + shift_ref[...]).astype(out_ref.dtype)


def _im2col_t(x, kh, kw, stride, padding, dilation):
    """NCHW -> (K, M) im2col with K flattened as (Cin, KH, KW) (matches PyTorch OIHW
    weights) and M flattened as (N, OH, OW).
    NOTE: this host-side expansion inflates input HBM traffic by KH*KW.
    # TODO(synk): fold the KH*KW tap loop into the kernel (reuse one padded NHWC input
    # tile KH*KW times from VMEM) to cut HBM reads ~KH*KW x for memory-bound convs."""
    n, c, h, w = x.shape
    oh = (h + 2 * padding - dilation * (kh - 1) - 1) // stride + 1
    ow = (w + 2 * padding - dilation * (kw - 1) - 1) // stride + 1
    xp = jnp.pad(x, ((0, 0), (0, 0), (padding, padding), (padding, padding)))

    cols = []
    for i in range(kh):
        for j in range(kw):
            hi = i * dilation
            wj = j * dilation
            patch = xp[
                :,
                :,
                hi : hi + stride * (oh - 1) + 1 : stride,
                wj : wj + stride * (ow - 1) + 1 : stride,
            ]  # (N, C, OH, OW)
            cols.append(patch)
    col = jnp.stack(cols, axis=2)                              # (N, C, KH*KW, OH, OW)
    col = col.reshape(n, c * kh * kw, oh * ow)                 # (N, K, OH*OW)
    col = col.transpose(1, 0, 2).reshape(c * kh * kw, n * oh * ow)   # (K, M)
    return col, oh, ow


@functools.partial(jax.jit, static_argnames=("stride", "padding", "dilation", "tm"))
def conv_bn_2d(x, weight, bias, gamma, beta, *, stride=1, padding=0, dilation=1, tm=256):
    """x: (N, Cin, H, W); weight: (Cout, Cin, KH, KW); returns (N, Cout, OH, OW).

    `bias` is accepted for API parity but intentionally unused: training-mode BN
    subtracts the batch mean, which cancels the conv bias exactly."""
    del bias
    n = x.shape[0]
    c_out, _, kh, kw = weight.shape

    patches_t, oh, ow = _im2col_t(
        x.astype(jnp.float32), kh, kw, stride, padding, dilation
    )  # (K, M)
    k, m = patches_t.shape

    # Pad M (lane axis) to a multiple of the tile, Cout (sublane axis) to a multiple of 8.
    tm = min(tm, _round_up(m, 128))
    m_pad = _round_up(m, tm)
    c_out_pad = _round_up(c_out, 8)
    num_tiles = m_pad // tm
    inv_m = 1.0 / m  # real M: padded (zero) columns contribute exactly 0 to sum/sumsq

    # bf16 MXU operands; gamma/beta stay f32.
    patches_t = jnp.pad(patches_t, ((0, 0), (0, m_pad - m))).astype(jnp.bfloat16)
    w_mat = jnp.pad(
        weight.astype(jnp.float32).reshape(c_out, k), ((0, c_out_pad - c_out), (0, 0))
    ).astype(jnp.bfloat16)
    g_mat = jnp.pad(gamma.astype(jnp.float32), (0, c_out_pad - c_out)).reshape(c_out_pad, 1)
    b_mat = jnp.pad(beta.astype(jnp.float32), (0, c_out_pad - c_out)).reshape(c_out_pad, 1)

    # ---- Pass 1: conv tiles + per-channel statistics -> fused scale/shift ----
    conv_t, scale, shift = pl.pallas_call(
        functools.partial(conv_stats_kernel, inv_m=inv_m),
        grid=(num_tiles,),
        in_specs=[
            pl.BlockSpec((k, tm), lambda i: (0, i)),
            pl.BlockSpec((c_out_pad, k), lambda i: (0, 0)),
            pl.BlockSpec((c_out_pad, 1), lambda i: (0, 0)),
            pl.BlockSpec((c_out_pad, 1), lambda i: (0, 0)),
        ],
        out_specs=[
            pl.BlockSpec((c_out_pad, tm), lambda i: (0, i)),
            pl.BlockSpec((c_out_pad, 1), lambda i: (0, 0)),
            pl.BlockSpec((c_out_pad, 1), lambda i: (0, 0)),
        ],
        out_shape=[
            jax.ShapeDtypeStruct((c_out_pad, m_pad), jnp.float32),
            jax.ShapeDtypeStruct((c_out_pad, 1), jnp.float32),
            jax.ShapeDtypeStruct((c_out_pad, 1), jnp.float32),
        ],
        scratch_shapes=[
            pltpu.VMEM((c_out_pad, 1), jnp.float32),
            pltpu.VMEM((c_out_pad, 1), jnp.float32),
        ],
        compiler_params=pltpu.CompilerParams(
            dimension_semantics=("arbitrary",),  # stats accumulate sequentially over M tiles
            vmem_limit_bytes=VMEM_LIMIT_BYTES,
        ),
        cost_estimate=pl.CostEstimate(
            flops=2 * m_pad * k * c_out_pad,
            transcendentals=c_out_pad,
            bytes_accessed=(k * m_pad * 2 + c_out_pad * k * 2 + c_out_pad * m_pad * 4),
        ),
    )(patches_t, w_mat, g_mat, b_mat)

    # ---- Pass 2: apply fused scale/shift (mem-bound, parallel over M tiles) ----
    out_t = pl.pallas_call(
        bn_apply_kernel,
        grid=(num_tiles,),
        in_specs=[
            pl.BlockSpec((c_out_pad, tm), lambda i: (0, i)),
            pl.BlockSpec((c_out_pad, 1), lambda i: (0, 0)),
            pl.BlockSpec((c_out_pad, 1), lambda i: (0, 0)),
        ],
        out_specs=pl.BlockSpec((c_out_pad, tm), lambda i: (0, i)),
        out_shape=jax.ShapeDtypeStruct((c_out_pad, m_pad), jnp.float32),
        compiler_params=pltpu.CompilerParams(
            dimension_semantics=("parallel",),  # shards M tiles across TCs (v7x megacore)
            vmem_limit_bytes=VMEM_LIMIT_BYTES,
        ),
        cost_estimate=pl.CostEstimate(
            flops=2 * m_pad * c_out_pad,
            transcendentals=0,
            bytes_accessed=2 * c_out_pad * m_pad * 4,
        ),
    )(conv_t, scale, shift)

    # (Cout_pad, M_pad) -> slice -> (Cout, N, OH, OW) -> NCHW
    return out_t[:c_out, :m].reshape(c_out, n, oh, ow).transpose(1, 0, 2, 3)


def _reference(x, weight, bias, gamma, beta, *, stride, padding, dilation):
    """Plain-JAX f32 reference (lax conv + training-mode BN, bias included)."""
    y = jax.lax.conv_general_dilated(
        x.astype(jnp.float32),
        weight.astype(jnp.float32),
        window_strides=(stride, stride),
        padding=[(padding, padding), (padding, padding)],
        rhs_dilation=(dilation, dilation),
        dimension_numbers=("NCHW", "OIHW", "NCHW"),
    ) + bias.reshape(1, -1, 1, 1)
    mean = jnp.mean(y, axis=(0, 2, 3), keepdims=True)
    var = jnp.mean((y - mean) ** 2, axis=(0, 2, 3), keepdims=True)
    return (y - mean) * jax.lax.rsqrt(var + EPS) * gamma.reshape(1, -1, 1, 1) + beta.reshape(
        1, -1, 1, 1
    )


if __name__ == "__main__":
    # ConvBn2d(in_channels=4, out_channels=8, kernel_size=3, stride=1, padding=1)
    N, C_IN, H, W = 2, 4, 16, 16
    C_OUT, KH, KW = 8, 3, 3
    STRIDE, PADDING, DILATION = 1, 1, 1

    key = jax.random.PRNGKey(0)
    kx, kw_, kb, kg, kbe = jax.random.split(key, 5)

    x = jax.random.normal(kx, (N, C_IN, H, W), dtype=jnp.float32)
    fan_in = C_IN * KH * KW
    bound = 1.0 / (fan_in ** 0.5)
    weight = jax.random.uniform(kw_, (C_OUT, C_IN, KH, KW), jnp.float32, -bound, bound)
    bias = jax.random.uniform(kb, (C_OUT,), jnp.float32, -bound, bound)
    gamma = 1.0 + 0.1 * jax.random.normal(kg, (C_OUT,), jnp.float32)
    beta = 0.1 * jax.random.normal(kbe, (C_OUT,), jnp.float32)

    out = conv_bn_2d(
        x, weight, bias, gamma, beta, stride=STRIDE, padding=PADDING, dilation=DILATION
    )
    out = jax.block_until_ready(out)

    ref = _reference(
        x, weight, bias, gamma, beta, stride=STRIDE, padding=PADDING, dilation=DILATION
    )
    assert out.shape == (N, C_OUT, H, W), out.shape
    # bf16 MXU operands vs. an all-f32 reference: a few 1e-3 max-abs error is expected;
    # genuine layout/indexing bugs would show up as O(1) errors.
    max_err = float(jnp.max(jnp.abs(out - ref)))
    assert jnp.allclose(out, ref, atol=5e-2, rtol=5e-2), max_err
    print("KERNEL_OK")
</pallas_src>

<mosaic_0001>
module attributes {stable_mosaic.version = 11 : i64} {
  func.func @bn_apply_kernel(%arg0: i32, %arg1: memref<8x256xf32, #tpu.memory_space<vmem>>, %arg2: memref<8x1xf32, #tpu.memory_space<vmem>>, %arg3: memref<8x1xf32, #tpu.memory_space<vmem>>, %arg4: memref<8x256xf32, #tpu.memory_space<vmem>>) attributes {dimension_semantics = [#tpu.dimension_semantics<parallel>], iteration_bounds = array<i64: 2>, scalar_prefetch = 0 : i64, scratch_operands = 0 : i64, tpu.core_type = #tpu.core_type<tc>, window_params = [{transform_indices = @transform_0, window_bounds = array<i64: 8, 256>}, {pipeline_mode = #tpu.pipeline_mode<synchronous>, transform_indices = @transform_1, window_bounds = array<i64: 8, 1>}, {pipeline_mode = #tpu.pipeline_mode<synchronous>, transform_indices = @transform_2, window_bounds = array<i64: 8, 1>}, {transform_indices = @transform_3, window_bounds = array<i64: 8, 256>}]} {
    %c0 = arith.constant 0 : index
    %c0_0 = arith.constant 0 : index
    %0 = vector.load %arg1[%c0, %c0_0] : memref<8x256xf32, #tpu.memory_space<vmem>>, vector<8x256xf32>
    %c0_1 = arith.constant 0 : index
    %c0_2 = arith.constant 0 : index
    %1 = vector.load %arg2[%c0_1, %c0_2] : memref<8x1xf32, #tpu.memory_space<vmem>>, vector<8x1xf32>
    %2 = vector.broadcast %1 : vector<8x1xf32> to vector<8x256xf32>
    %3 = arith.mulf %0, %2 : vector<8x256xf32>
    %c0_3 = arith.constant 0 : index
    %c0_4 = arith.constant 0 : index
    %4 = vector.load %arg3[%c0_3, %c0_4] : memref<8x1xf32, #tpu.memory_space<vmem>>, vector<8x1xf32>
    %5 = vector.broadcast %4 : vector<8x1xf32> to vector<8x256xf32>
    %6 = arith.addf %3, %5 : vector<8x256xf32>
    %c0_5 = arith.constant 0 : index
    %c0_6 = arith.constant 0 : index
    %7 = vector.load %arg4[%c0_5, %c0_6] : memref<8x256xf32, #tpu.memory_space<vmem>>, vector<8x256xf32>
    tpu.vector_store %arg4[%c0_5, %c0_6], %6 {strides = array<i32>} : memref<8x256xf32, #tpu.memory_space<vmem>>, vector<8x256xf32>,
    return
  }
  func.func @transform_0(%arg0: i32) -> (i32, i32) {
    %c0_i32 = arith.constant 0 : i32
    %c0_i32_0 = arith.constant 0 : i32
    return %c0_i32, %arg0 : i32, i32
  }
  func.func @transform_1(%arg0: i32) -> (i32, i32) {
    %c0_i32 = arith.constant 0 : i32
    %c0_i32_0 = arith.constant 0 : i32
    %c0_i32_1 = arith.constant 0 : i32
    return %c0_i32, %c0_i32_0 : i32, i32
  }
  func.func @transform_2(%arg0: i32) -> (i32, i32) {
    %c0_i32 = arith.constant 0 : i32
    %c0_i32_0 = arith.constant 0 : i32
    %c0_i32_1 = arith.constant 0 : i32
    return %c0_i32, %c0_i32_0 : i32, i32
  }
  func.func @transform_3(%arg0: i32) -> (i32, i32) {
    %c0_i32 = arith.constant 0 : i32
    %c0_i32_0 = arith.constant 0 : i32
    return %c0_i32, %arg0 : i32, i32
  }
}

module attributes {stable_mosaic.version = 11 : i64} {
  func.func @conv_stats_kernel(%arg0: i32, %arg1: memref<36x256xbf16, #tpu.memory_space<vmem>>, %arg2: memref<8x36xbf16, #tpu.memory_space<vmem>>, %arg3: memref<8x1xf32, #tpu.memory_space<vmem>>, %arg4: memref<8x1xf32, #tpu.memory_space<vmem>>, %arg5: memref<8x256xf32, #tpu.memory_space<vmem>>, %arg6: memref<8x1xf32, #tpu.memory_space<vmem>>, %arg7: memref<8x1xf32, #tpu.memory_space<vmem>>, %arg8: memref<8x1xf32, #tpu.memory_space<vmem>>, %arg9: memref<8x1xf32, #tpu.memory_space<vmem>>) attributes {dimension_semantics = [#tpu.dimension_semantics<arbitrary>], iteration_bounds = array<i64: 2>, scalar_prefetch = 0 : i64, scratch_operands = 2 : i64, tpu.core_type = #tpu.core_type<tc>, window_params = [{transform_indices = @transform_0, window_bounds = array<i64: 36, 256>}, {pipeline_mode = #tpu.pipeline_mode<synchronous>, transform_indices = @transform_1, window_bounds = array<i64: 8, 36>}, {pipeline_mode = #tpu.pipeline_mode<synchronous>, transform_indices = @transform_2, window_bounds = array<i64: 8, 1>}, {pipeline_mode = #tpu.pipeline_mode<synchronous>, transform_indices = @transform_3, window_bounds = array<i64: 8, 1>}, {transform_indices = @transform_4, window_bounds = array<i64: 8, 256>}, {pipeline_mode = #tpu.pipeline_mode<synchronous>, transform_indices = @transform_5, window_bounds = array<i64: 8, 1>}, {pipeline_mode = #tpu.pipeline_mode<synchronous>, transform_indices = @transform_6, window_bounds = array<i64: 8, 1>}]} {
    %c0_i32 = arith.constant 0 : i32
    %0 = arith.cmpi eq, %arg0, %c0_i32 : i32
    %1 = arith.extui %0 : i1 to i32
    %c0_i32_0 = arith.constant 0 : i32
    %2 = arith.cmpi ne, %1, %c0_i32_0 : i32
    scf.if %2 {
      %cst_17 = arith.constant 0.000000e+00 : f32
      %21 = vector.broadcast %cst_17 : f32 to vector<8x1xf32>
      %c0_18 = arith.constant 0 : index
      %c0_19 = arith.constant 0 : index
      %22 = vector.load %arg8[%c0_18, %c0_19] : memref<8x1xf32, #tpu.memory_space<vmem>>, vector<8x1xf32>
      tpu.vector_store %arg8[%c0_18, %c0_19], %21 {strides = array<i32>} : memref<8x1xf32, #tpu.memory_space<vmem>>, vector<8x1xf32>,
      %cst_20 = arith.constant 0.000000e+00 : f32
      %23 = vector.broadcast %cst_20 : f32 to vector<8x1xf32>
      %c0_21 = arith.constant 0 : index
      %c0_22 = arith.constant 0 : index
      %24 = vector.load %arg9[%c0_21, %c0_22] : memref<8x1xf32, #tpu.memory_space<vmem>>, vector<8x1xf32>
      tpu.vector_store %arg9[%c0_21, %c0_22], %23 {strides = array<i32>} : memref<8x1xf32, #tpu.memory_space<vmem>>, vector<8x1xf32>,
    } else {
    }
    %c0 = arith.constant 0 : index
    %c0_1 = arith.constant 0 : index
    %3 = vector.load %arg2[%c0, %c0_1] : memref<8x36xbf16, #tpu.memory_space<vmem>>, vector<8x36xbf16>
    %c0_2 = arith.constant 0 : index
    %c0_3 = arith.constant 0 : index
    %4 = vector.load %arg1[%c0_2, %c0_3] : memref<36x256xbf16, #tpu.memory_space<vmem>>, vector<36x256xbf16>
    %cst = arith.constant dense<0.000000e+00> : vector<8x256xf32>
    %5 = tpu.matmul %3, %4, %cst {dimension_numbers = #tpu.dot_dimension_numbers<[1], [0], [0], [1], [0, 0, 1, 1], [], []>} : vector<8x36xbf16>, vector<36x256xbf16>, vector<8x256xf32> -> vector<8x256xf32>
    %c0_4 = arith.constant 0 : index
    %c0_5 = arith.constant 0 : index
    %6 = vector.load %arg5[%c0_4, %c0_5] : memref<8x256xf32, #tpu.memory_space<vmem>>, vector<8x256xf32>
    tpu.vector_store %arg5[%c0_4, %c0_5], %5 {strides = array<i32>} : memref<8x256xf32, #tpu.memory_space<vmem>>, vector<8x256xf32>,
    %c0_6 = arith.constant 0 : index
    %c0_7 = arith.constant 0 : index
    %7 = vector.load %arg8[%c0_6, %c0_7] : memref<8x1xf32, #tpu.memory_space<vmem>>, vector<8x1xf32>
    %cst_8 = arith.constant dense<0.000000e+00> : vector<8xf32>
    %8 = vector.multi_reduction <add>, %5, %cst_8 [1] : vector<8x256xf32> to vector<8xf32>
    %9 = vector.shape_cast %8 : vector<8xf32> to vector<8x1xf32>
    %10 = arith.addf %7, %9 : vector<8x1xf32>
    %c0_9 = arith.constant 0 : index
    %c0_10 = arith.constant 0 : index
    %11 = vector.load %arg8[%c0_9, %c0_10] : memref<8x1xf32, #tpu.memory_space<vmem>>, vector<8x1xf32>
    tpu.vector_store %arg8[%c0_9, %c0_10], %10 {strides = array<i32>} : memref<8x1xf32, #tpu.memory_space<vmem>>, vector<8x1xf32>,
    %c0_11 = arith.constant 0 : index
    %c0_12 = arith.constant 0 : index
    %12 = vector.load %arg9[%c0_11, %c0_12] : memref<8x1xf32, #tpu.memory_space<vmem>>, vector<8x1xf32>
    %13 = arith.mulf %5, %5 : vector<8x256xf32>
    %cst_13 = arith.constant dense<0.000000e+00> : vector<8xf32>
    %14 = vector.multi_reduction <add>, %13, %cst_13 [1] : vector<8x256xf32> to vector<8xf32>
    %15 = vector.shape_cast %14 : vector<8xf32> to vector<8x1xf32>
    %16 = arith.addf %12, %15 : vector<8x1xf32>
    %c0_14 = arith.constant 0 : index
    %c0_15 = arith.constant 0 : index
    %17 = vector.load %arg9[%c0_14, %c0_15] : memref<8x1xf32, #tpu.memory_space<vmem>>, vector<8x1xf32>
    tpu.vector_store %arg9[%c0_14, %c0_15], %16 {strides = array<i32>} : memref<8x1xf32, #tpu.memory_space<vmem>>, vector<8x1xf32>,
    %c1_i32 = arith.constant 1 : i32
    %18 = arith.cmpi eq, %arg0, %c1_i32 : i32
    %19 = arith.extui %18 : i1 to i32
    %c0_i32_16 = arith.constant 0 : i32
    %20 = arith.cmpi ne, %19, %c0_i32_16 : i32
    scf.if %20 {
      %c0_17 = arith.constant 0 : index
      %c0_18 = arith.constant 0 : index
      %21 = vector.load %arg8[%c0_17, %c0_18] : memref<8x1xf32, #tpu.memory_space<vmem>>, vector<8x1xf32>
      %cst_19 = arith.constant 0.001953125 : f32
      %22 = vector.broadcast %cst_19 : f32 to vector<8x1xf32>
      %23 = arith.mulf %21, %22 : vector<8x1xf32>
      %c0_20 = arith.constant 0 : index
      %c0_21 = arith.constant 0 : index
      %24 = vector.load %arg9[%c0_20, %c0_21] : memref<8x1xf32, #tpu.memory_space<vmem>>, vector<8x1xf32>
      %cst_22 = arith.constant 0.001953125 : f32
      %25 = vector.broadcast %cst_22 : f32 to vector<8x1xf32>
      %26 = arith.mulf %24, %25 : vector<8x1xf32>
      %27 = arith.mulf %23, %23 : vector<8x1xf32>
      %28 = arith.subf %26, %27 : vector<8x1xf32>
      %cst_23 = arith.constant 0.000000e+00 : f32
      %29 = vector.broadcast %cst_23 : f32 to vector<8x1xf32>
      %30 = arith.maximumf %28, %29 : vector<8x1xf32>
      %cst_24 = arith.constant 9.99999974E-6 : f32
      %31 = vector.broadcast %cst_24 : f32 to vector<8x1xf32>
      %32 = arith.addf %30, %31 : vector<8x1xf32>
      %33 = math.rsqrt %32 : vector<8x1xf32>
      %c0_25 = arith.constant 0 : index
      %c0_26 = arith.constant 0 : index
      %34 = vector.load %arg3[%c0_25, %c0_26] : memref<8x1xf32, #tpu.memory_space<vmem>>, vector<8x1xf32>
      %35 = arith.mulf %34, %33 : vector<8x1xf32>
      %c0_27 = arith.constant 0 : index
      %c0_28 = arith.constant 0 : index
      %36 = vector.load %arg6[%c0_27, %c0_28] : memref<8x1xf32, #tpu.memory_space<vmem>>, vector<8x1xf32>
      tpu.vector_store %arg6[%c0_27, %c0_28], %35 {strides = array<i32>} : memref<8x1xf32, #tpu.memory_space<vmem>>, vector<8x1xf32>,
      %c0_29 = arith.constant 0 : index
      %c0_30 = arith.constant 0 : index
      %37 = vector.load %arg4[%c0_29, %c0_30] : memref<8x1xf32, #tpu.memory_space<vmem>>, vector<8x1xf32>
      %38 = arith.mulf %23, %35 : vector<8x1xf32>
      %39 = arith.subf %37, %38 : vector<8x1xf32>
      %c0_31 = arith.constant 0 : index
      %c0_32 = arith.constant 0 : index
      %40 = vector.load %arg7[%c0_31, %c0_32] : memref<8x1xf32, #tpu.memory_space<vmem>>, vector<8x1xf32>
      tpu.vector_store %arg7[%c0_31, %c0_32], %39 {strides = array<i32>} : memref<8x1xf32, #tpu.memory_space<vmem>>, vector<8x1xf32>,
    } else {
    }
    return
  }
  func.func @transform_0(%arg0: i32) -> (i32, i32) {
    %c0_i32 = arith.constant 0 : i32
    %c0_i32_0 = arith.constant 0 : i32
    return %c0_i32, %arg0 : i32, i32
  }
  func.func @transform_1(%arg0: i32) -> (i32, i32) {
    %c0_i32 = arith.constant 0 : i32
    %c0_i32_0 = arith.constant 0 : i32
    %c0_i32_1 = arith.constant 0 : i32
    return %c0_i32, %c0_i32_0 : i32, i32
  }
  func.func @transform_2(%arg0: i32) -> (i32, i32) {
    %c0_i32 = arith.constant 0 : i32
    %c0_i32_0 = arith.constant 0 : i32
    %c0_i32_1 = arith.constant 0 : i32
    return %c0_i32, %c0_i32_0 : i32, i32
  }
  func.func @transform_3(%arg0: i32) -> (i32, i32) {
    %c0_i32 = arith.constant 0 : i32
    %c0_i32_0 = arith.constant 0 : i32
    %c0_i32_1 = arith.constant 0 : i32
    return %c0_i32, %c0_i32_0 : i32, i32
  }
  func.func @transform_4(%arg0: i32) -> (i32, i32) {
    %c0_i32 = arith.constant 0 : i32
    %c0_i32_0 = arith.constant 0 : i32
    return %c0_i32, %arg0 : i32, i32
  }
  func.func @transform_5(%arg0: i32) -> (i32, i32) {
    %c0_i32 = arith.constant 0 : i32
    %c0_i32_0 = arith.constant 0 : i32
    %c0_i32_1 = arith.constant 0 : i32
    return %c0_i32, %c0_i32_0 : i32, i32
  }
  func.func @transform_6(%arg0: i32) -> (i32, i32) {
    %c0_i32 = arith.constant 0 : i32
    %c0_i32_0 = arith.constant 0 : i32
    %c0_i32_1 = arith.constant 0 : i32
    return %c0_i32, %c0_i32_0 : i32, i32
  }
}

</mosaic_0001>

<bundles_post_ra>
// kernel: conv_bn_2d.3
= control target key start
LH: loop header
LB: loop body
LE: loop exit
PB: predicated region body
PF: predicated region fallthrough
CT: control target
= control target key end

     0   :  { %s300_s12 = smov 0   ;;  %s323_s0 = inlined_call_operand.vmem [shape: f32[8,512], index: 0, kind: input, shape index: {}]   ;;  %s324_s1 = inlined_call_operand.vmem [shape: f32[8,1], index: 1, kind: input, shape index: {}]   ;;  %s325_s2 = inlined_call_operand.vmem [shape: f32[8,1], index: 2, kind: input, shape index: {}]   ;;  %s326_s3 = inlined_call_operand.vmem [shape: f32[8,512], index: 3, kind: output, shape index: {}]  }
   0x1 LB: > { %s250_s13 = sadd.s32 4294967295, %s277_s12   ;;  %p254_p0 = scmp.ge.s32.totalorder %s277_s12, 1  ;;  %s277_s12 = sphi %s300_s12, %s13_s12  }
   0x2   : > { %p138_p1 = scmp.lt.s32.totalorder %s277_s12, 3 }
   0x4   : > { %p139_p2 = pnand %p254_p0, %p138_p1 }
   0x5   : > { %v176_v0 = vld [vmem:[%s324_s1] sm:$0xff] (!%p139_p2)  ;;  %v279_v1 = vmov (!%p139_p2), 0   ;;  %s255_s18 = sshll.u32 (!%p139_p2), %s250_s13, 1 }
   0x6   : > { %142 = sbr.rel (%p139_p2) target bundleno = 142 (0x8e), region = 32  ;;  %270 = vset.pattern.permute.xlu0 (!%p139_p2), %v279_v1  ;;  %v184_v2 = vld [vmem:[%s325_s2] sm:$0xff] (!%p139_p2)  ;;  %p163_p3 = scmp.lt.s32.totalorder (!%p139_p2), %s255_s18, 3 }
   0x7   : > { %179 = vperm.xlu0 (!%p139_p2), %270, %v176_v0  }
   0xb   : > { %187 = vperm.xlu0 (!%p139_p2), %270, %v184_v2  }
   0xd   : > { %s328_s18 = smov (!%p163_p3, %s255_s18), 3 }
   0xe   : > { %s256_s19 = sshll.u32 %s328_s18, 3 }
   0xf   : > { %s166_s22 = scalar_lea.vmem %s323_s0, %s256_s19  ;;  %s172_s25 = scalar_lea.vmem %s326_s3, %s256_s19 }
  0x10   : > { %v174_v4 = vld [vmem:[%s166_s22] sm:$0xff]  ;;  %v175_v5 = vld [vmem:[%s166_s22 + $0x8] sm:$0xff] }
  0x86   : > { %v180_v3 = vpop.permute.xlu0 %179 }
  0x87   : > { %v182_v6 = vmul.f32 %v180_v3, %v174_v4  ;;  %v183_v7 = vmul.f32 %v180_v3, %v175_v5 }
  0x8a   : > { %v188_v8 = vpop.permute.xlu0 %187 }
  0x8b   : > { %v190_v9 = vadd.f32 %v188_v8, %v182_v6  ;;  %v191_v10 = vadd.f32 %v188_v8, %v183_v7 }
  0x8d   : > { %192 = vst [vmem:[%s172_s25] sm:$0xff] %v190_v9  ;;  %193 = vst [vmem:[%s172_s25 + $0x8] sm:$0xff] %v191_v10 }
  0x8e PF: > { %s13_s12 = sadd.s32 1, %s277_s12  }
  0x8f   : > { %p10_p4 = scmp.ge.s32.totalorder %s13_s12, 4  }
  0x91   :  { %12 = sbr.rel (!%p10_p4) target bundleno = 1 (0x1), region = 62 }

// kernel: conv_bn_2d.2
= control target key start
LH: loop header
LB: loop body
LE: loop exit
PB: predicated region body
PF: predicated region fallthrough
CT: control target
= control target key end

     0   :  { %s623_s21 = smov 0   ;;  %s625_s22 = smov 0   ;;  %s701_s0 = inlined_call_operand.vmem [shape: bf16[36,512], index: 0, kind: input, shape index: {}]   ;;  %s702_s1 = inlined_call_operand.vmem [shape: bf16[8,36], index: 1, kind: input, shape index: {}]   ;;  %s703_s2 = inlined_call_operand.vmem [shape: f32[8,1], index: 2, kind: input, shape index: {}]   ;;  %s704_s3 = inlined_call_operand.vmem [shape: f32[8,1], index: 3, kind: input, shape index: {}]   ;;  %s705_s4 = inlined_call_operand.vmem [shape: f32[8,512], index: 4, kind: output, shape index: {0}]   ;;  %s706_s5 = inlined_call_operand.vmem [shape: f32[8,1], index: 5, kind: output, shape index: {1}]   ;;  %s707_s6 = inlined_call_operand.vmem [shape: f32[8,1], index: 6, kind: output, shape index: {2}]  }
   0x1   :  { %s627_s23 = smov 0  }
   0x2 LB: > { %s639_s24 = sadd.s32 4294967295, %s584_s23   ;;  %s642_s25 = sadd.s32 1, %s584_s23   ;;  %s584_s23 = sphi %s627_s23, %s710_s23   ;;  %s580_s22 = sphi %s625_s22, %s709_s22   ;;  %s576_s21 = sphi %s623_s21, %s708_s21  }
   0x3   : > { %s21_s26 = ssub.s32 %s584_s23, %s642_s25  ;;  %s24_s27 = sadd.s32 1, %s580_s22 }
   0x4   : > { %p22_p0 = scmp.eq.s32.totalorder %s21_s26, 0  ;;  %p31_p1 = scmp.ne.s32.totalorder %s580_s22, %s576_s21 }
   0x5   : > { %p32_p2 = scmp.eq.s32.totalorder %s584_s23, 0  ;;  %p505_p4 = scmp.ge.s32.totalorder %s584_s23, 2 }
   0x6   : > { %s651_s28 = scalar_select %p22_p0, %s580_s22, %s24_s27  }
   0x7   : > { %p33_p3 = por %p32_p2, %p31_p1  ;;  %197 = sbr.rel (%p505_p4) target bundleno = 21 (0x15), region = 28 }
   0xe   : > { %200 = sbr.rel (!%p33_p3) target bundleno = 21 (0x15), region = 32  ;;  %s202_s29 = sand.u32 (%p33_p3), 1, %s580_s22  }
   0xf   : > { %s523_s30 = sshll.u32 (%p33_p3), %s584_s23, 3  ;;  %s524_s7 = smul.u32 (%p33_p3), 40, %s202_s29 }
  0x10   : > { %s207_s10 = scalar_lea.vmem (%p33_p3), %s701_s0, %s523_s30 }
  0x11   : > { %v243_v0 = vld [vmem:[%s207_s10] sm:$0xff] (%p33_p3)  ;;  %v245_v1 = vld [vmem:[%s207_s10 + $0x10] sm:$0xff] (%p33_p3)  ;;  %s204_s11 = scalar_lea.vmem (%p33_p3), [#allocation4], %s524_s7 }
  0x12   : > { %v247_v2 = vld [vmem:[%s207_s10 + $0x20] sm:$0xff] (%p33_p3)  ;;  %v249_v3 = vld [vmem:[%s207_s10 + $0x30] sm:$0xff] (%p33_p3)  ;;  %244 = vst [vmem:[%s204_s11] sm:$0xff] (%p33_p3), %v243_v0  ;;  %246 = vst [vmem:[%s204_s11 + $0x8] sm:$0xff] (%p33_p3), %v245_v1 }
  0x13   : > { %v251_v4 = vld [vmem:[%s207_s10 + $0x40] sm:$0xff] (%p33_p3)  ;;  %248 = vst [vmem:[%s204_s11 + $0x10] sm:$0xff] (%p33_p3), %v247_v2  ;;  %250 = vst [vmem:[%s204_s11 + $0x18] sm:$0xff] (%p33_p3), %v249_v3 }
  0x14   : > { %252 = vst [vmem:[%s204_s11 + $0x20] sm:$0xff] (%p33_p3), %v251_v4 }
  0x15 PF: > { %p508_p5 = scmp.ge.s32.totalorder %s584_s23, 1  ;;  %p257_p6 = scmp.lt.s32.totalorder %s584_s23, 3 }
  0x17   : > { %p258_p7 = pnand %p508_p5, %p257_p6 }
  0x18   : > { %s264_s12 = sand.u32 (!%p258_p7), 1, %s576_s21   ;;  %s509_s13 = sshll.u32 (!%p258_p7), %s639_s24, 1 }
  0x19   : > { %261 = sbr.rel (%p258_p7) target bundleno = 449 (0x1c1), region = 70  ;;  %p295_p8 = scmp.lt.s32.totalorder (!%p258_p7), %s509_s13, 3 }
  0x1a   : > { %s525_s14 = smul.u32 (!%p258_p7), 40, %s264_s12  ;;  %p511_p9 = scmp.ne.s32.totalorder (!%p258_p7), %s639_s24, 0 }
  0x1c   : > { %s266_s19 = scalar_lea.vmem (!%p258_p7), [#allocation4], %s525_s14 }
  0x20   : > { %s712_s13 = smov (!%p295_p8, %s509_s13), 3  ;;  %304 = sbr.rel (%p511_p9) target bundleno = 39 (0x27), region = 78 }
  0x21   : > { %s510_s15 = sshll.u32 %s712_s13, 3  ;;  %vm305_vm0 = vcmask (!%p511_p9), 7168   ;;  %v586_v5 = vmov (!%p511_p9), 0.0  }
  0x22   : > { %s666_s18 = scalar_lea.vmem %s705_s4, %s510_s15  ;;  %306 = vst.msk [vmem:[#allocation2] sm:$0xff] (!%p511_p9), %vm305_vm0, %v586_v5  ;;  %307 = vst.msk [vmem:[#allocation3] sm:$0xff] (!%p511_p9), %vm305_vm0, %v586_v5 }
  0x27 PF: > { %v552_v6 = vld [vmem:[%s266_s19 + $0x4] ss:$8 sps:$4 sm:$0xff]   ;;  %v554_v7 = vld [vmem:[%s266_s19] ss:$8 sps:$4 sm:$0xff]   ;;  %v587_v8 = vmov 0   ;;  %vm343_vm1 = vcmask 1041408  }
  0x28   : > { %382 = vmatprep.mubr.bf16.mxu0 %v587_v8  ;;  %350 = vmatprep.subr.bf16.mxu0 %v552_v6  ;;  %v555_v9 = vld [vmem:[%s266_s19 + $0x14] ss:$8 sps:$4 sm:$0xff]   ;;  %v313_v10 = vld [vmem:[%s266_s19 + $0x20] sm:$0x33]  ;;  %v557_v11 = vld [vmem:[%s266_s19 + $0x10] ss:$8 sps:$4 sm:$0xff]  }
  0x29   : > { %351 = vmatpush1.bf16.msra.mxu0 %v554_v7  ;;  %v517_v12 = vcombine.high %v313_v10, %v313_v10  ;;  %v516_v13 = vcombine.low %v313_v10, %v313_v10  ;;  %v308_v15 = vld [vmem:[%s702_s1] sm:$0xf]  ;;  %vm339_vm2 = vcmask 293888   ;;  %vm398_vm3 = vcmask 7168   ;;  %v400_v27 = vld [vmem:[#allocation3] sm:$0xff]  ;;  %p520_p10 = scmp.ne.s32.totalorder %s639_s24, 1 }
  0x2a   : > { %352 = vmatprep.subr.bf16.mxu0 %v555_v9  ;;  %v393_v24 = vld [vmem:[#allocation2] sm:$0xff] }
  0x2b   : > { %v345_v14 = vsel %vm343_vm1, %v516_v13, 0  ;;  %v421_v38 = vld [vmem:[%s703_s2] sm:$0xff] (!%p520_p10) }
  0x2c   : > { %v424_v41 = vld [vmem:[%s704_s3] sm:$0xff] (!%p520_p10) }
  0x2d   : > { %353 = vmatpush1.bf16.msra.mxu0 %v557_v11 }
  0x2e   : > { %518 = vmatprep.subr.msk.bf16.mxu0 %vm343_vm1, %v517_v12 }
  0x31   : > { %355 = vmatpush1.bf16.msra.mxu0 %v345_v14 }
  0x34   : > { %519 = vmatmul.mubr.msk.bf16.vlgmr.msra.gmra.mrb[0].mxu0 %vm339_vm2, %v308_v15 }
 0x107   : > { %v384_v16 = vpop.f32.mrb[0].mxu0 }
 0x108   : > { %391 = vst [vmem:[%s666_s18] sm:$0xff] %v384_v16  ;;  %v386_v17 = vpop.f32.mrb[1].mxu0  ;;  %v401_v18 = vmul.f32 %v384_v16, %v384_v16 }
 0x109   : > { %392 = vst [vmem:[%s666_s18 + $0x8] sm:$0xff] %v386_v17  ;;  %v388_v19 = vpop.f32.mrb[2].mxu0  ;;  %v394_v20 = vadd.f32 %v386_v17, %v384_v16  ;;  %v402_v21 = vmul.f32 %v386_v17, %v386_v17 }
 0x10a   : > { %v389_v22 = vpop.f32.mrb[3].mxu0 }
 0x10b   : > { %395 = vadd.xlane.f32.xlu0 %v394_v20  ;;  %v403_v23 = vadd.f32 %v402_v21, %v401_v18 }
 0x10f   : > { %404 = vadd.xlane.f32.xlu0 %v403_v23 }
 0x198   : > { %v396_v25 = vpop.xlane.xlu0 %395 }
 0x199   : > { %v397_v26 = vadd.f32 %v396_v25, %v393_v24  ;;  %411 = sbr.rel (%p520_p10) target bundleno = 449 (0x1c1), region = 82 }
 0x19b   : > { %399 = vst.msk [vmem:[#allocation2] sm:$0xff] %vm398_vm3, %v397_v26 }
 0x19c   : > { %v405_v28 = vpop.xlane.xlu0 %404 }
 0x19d   : > { %v406_v29 = vadd.f32 %v405_v28, %v400_v27 }
 0x19f   : > { %407 = vst.msk [vmem:[#allocation3] sm:$0xff] %vm398_vm3, %v406_v29 }
 0x1a2   : > { %v412_v30 = vld [vmem:[#allocation2] sm:$0xff] }
 0x1a3   : > { %v413_v32 = vmul.f32 0.001953125, %v412_v30 }
 0x1a5   : > { %v416_v34 = vmul.f32 %v413_v32, %v413_v32 }
 0x1a6   : > { %v414_v31 = vld [vmem:[#allocation3] sm:$0xff] }
 0x1a7   : > { %v415_v33 = vmul.f32 0.001953125, %v414_v31 }
 0x1a9   : > { %v417_v35 = vsub.f32 %v415_v33, %v416_v34 }
 0x1ab   : > { %v418_v36 = vmax.f32 %v417_v35, 0.0 }
 0x1ad   : > { %v419_v37 = vadd.f32 1e-05, %v418_v36 }
 0x1af   : > { %560 = vrsqrt.f32 %v419_v37 }
 0x1b9   : > { %v561_v39 = vpop.eup %560 }
 0x1ba   : > { %v422_v40 = vmul.f32 %v561_v39, %v421_v38 }
 0x1bc   : > { %423 = vst.msk [vmem:[%s706_s5] sm:$0xff] %vm398_vm3, %v422_v40  ;;  %v425_v42 = vmul.f32 %v422_v40, %v413_v32 }
 0x1be   : > { %v426_v43 = vsub.f32 %v424_v41, %v425_v42 }
 0x1c0   : > { %427 = vst.msk [vmem:[%s707_s6] sm:$0xff] %vm398_vm3, %v426_v43 }
 0x1c1 PF: > { %p14_p11 = scmp.ge.s32.totalorder %s642_s25, 4   ;;  %s708_s21 = smov %s580_s22 }
 0x1c2   : > { %s709_s22 = smov %s651_s28  ;;  %s710_s23 = smov %s642_s25 }
 0x1c3   :  { %16 = sbr.rel (!%p14_p11) target bundleno = 2 (0x2), region = 133 }

</bundles_post_ra>
